<compile_context>
chip_gen: v5e
topology: v5e:2x2
jax: 0.10.0
libtpu: 0.0.40
codegen_flags: <defaults>
</compile_context>

<pallas_src>
import functools

import numpy as np

import jax
import jax.numpy as jnp
from jax import lax
from jax.experimental import pallas as pl
from jax.experimental.pallas import tpu as pltpu


def _stats_kernel(rows_ref, sumsq_ref, vecsq_ref, norms_ref, acc_sq, acc_vec):
    """Row-tiled pass over centered `total`: per-row ||x||^2, their sum, ||sum_i x_i||^2."""
    i = pl.program_id(0)

    @pl.when(i == 0)
    def _():
        acc_sq[...] = jnp.zeros_like(acc_sq)
        acc_vec[...] = jnp.zeros_like(acc_vec)

    x = rows_ref[...].astype(jnp.float32)                  # (T, D)
    rn = jnp.sum(x * x, axis=1, keepdims=True)             # (T, 1) row squared norms
    norms_ref[...] = rn.reshape(1, rn.shape[0], 1)         # (1, T, 1) block of (nb, T, 1)
    acc_sq[...] += jnp.sum(rn).reshape(1, 1)
    acc_vec[...] += jnp.sum(x, axis=0, keepdims=True)      # (1, D)

    @pl.when(i == pl.num_programs(0) - 1)
    def _():
        sumsq_ref[...] = acc_sq[...]
        v = acc_vec[...]
        vecsq_ref[...] = jnp.sum(v * v).reshape(1, 1)


def _mmd_tile_kernel(bi_ref, bj_ref, nib_ref, lrows_ref, rrows_ref,
                     lnorm_ref, rnorm_ref, out_ref, *, half_blocks, kernel_num):
    t = pl.program_id(0)
    bi = bi_ref[t]                                          # SMEM scalar: block row
    bj = bj_ref[t]                                          # SMEM scalar: block col (>= bi)

    left = lrows_ref[...]                                   # (T, D), native dtype
    right = rrows_ref[...]                                  # (T, D), native dtype
    # Block Gram matrix: contract feature dims (trans-B) on the MXU, accumulate in f32.
    # TODO(synk): for large-D f32 inputs, casting left/right to bf16 here (keeping f32
    # accumulation + exact Phase-1 norms) would ~2x MXU throughput; kept exact for accuracy.
    gram = lax.dot_general(left, right, (((1,), (1,)), ((), ())),
                           preferred_element_type=jnp.float32)          # (T, T)

    lsq = lnorm_ref[0]                                      # (T, 1) row norms (Phase 1)
    rsq = rnorm_ref[0]                                      # (1, T) col norms (Phase 1)
    l2 = jnp.maximum(lsq + rsq - 2.0 * gram, 0.0)           # clamp fp cancellation

    # Multi-kernel RBF with precomputed -1/bw_i scalars (multiply, never divide).
    k = jnp.exp(l2 * nib_ref[0])
    for i in range(1, kernel_num):                          # static unroll (kernel_num=5)
        k = k + jnp.exp(l2 * nib_ref[i])

    # Lane-dense partial: only a sublane reduction here; the cross-lane reduction is done
    # once over all per-tile outputs in the wrapper (keeps the XLU free, no masked stores).
    col = jnp.sum(k, axis=0, keepdims=True)                 # (1, T)

    # +1 if both blocks come from the same domain (src/src or tgt/tgt), -1 cross-domain;
    # off-diagonal upper-triangle tiles also stand in for their transpose -> x2.
    same = (bi < half_blocks) == (bj < half_blocks)
    weight = jnp.where(same, 1.0, -1.0) * jnp.where(bj > bi, 2.0, 1.0)
    out_ref[...] = (weight * col).reshape(1, 1, col.shape[1])


def _pick_tile(b, d, itemsize):
    candidates = [t for t in (256, 128, 64, 32, 16, 8) if b % t == 0]
    if not candidates:
        # TODO(synk): batches not divisible by 8 would need masked / padded tiles.
        raise ValueError(f"batch size {b} must be a multiple of 8 for the tiled MMD kernel")
    budget = 48 << 20   # double-buffered inputs + f32 temporaries, safe under v7x 64 MiB
    for t in candidates:
        if 2 * 2 * t * d * itemsize + 8 * t * t * 4 <= budget:
            return t
    return candidates[-1]


def mmd_loss(source, target, kernel_mul=2.0, kernel_num=5):
    assert source.shape == target.shape and source.ndim == 2
    b, d = source.shape
    n = 2 * b

    total = jnp.concatenate([source, target], axis=0)        # (n, D)
    # MMD is translation invariant: center once (O(nD) XLA) for robust f32 statistics.
    mean = jnp.mean(total.astype(jnp.float32), axis=0, keepdims=True)
    total_c = (total.astype(jnp.float32) - mean).astype(total.dtype)

    itemsize = jnp.dtype(total_c.dtype).itemsize
    tile = _pick_tile(b, d, itemsize)
    nb = n // tile                # tile divides b, so every row block lies in one domain
    half_blocks = b // tile

    # ---- Phase 1: row norms + closed-form bandwidth statistics (O(nD), row-tiled) -----
    sumsq, vecsq, norms = pl.pallas_call(
        _stats_kernel,
        out_shape=(jax.ShapeDtypeStruct((1, 1), jnp.float32),
                   jax.ShapeDtypeStruct((1, 1), jnp.float32),
                   jax.ShapeDtypeStruct((nb, tile, 1), jnp.float32)),
        grid=(nb,),
        in_specs=[pl.BlockSpec((tile, d), lambda i: (i, 0))],
        out_specs=(pl.BlockSpec((1, 1), lambda i: (0, 0)),
                   pl.BlockSpec((1, 1), lambda i: (0, 0)),
                   pl.BlockSpec((1, tile, 1), lambda i: (i, 0, 0))),
        scratch_shapes=[pltpu.VMEM((1, 1), jnp.float32),
                        pltpu.VMEM((1, d), jnp.float32)],
        compiler_params=pltpu.CompilerParams(dimension_semantics=("arbitrary",)),
    )(total_c)

    # sum_{i,j} ||x_i - x_j||^2 = 2n * sum_i ||x_i||^2 - 2 * ||sum_i x_i||^2   (centered)
    sum_l2 = 2.0 * n * sumsq[0, 0] - 2.0 * vecsq[0, 0]
    bandwidth = sum_l2 / float(n * n - n)
    bandwidth = bandwidth / (kernel_mul ** (kernel_num // 2))
    bandwidth = jnp.maximum(bandwidth, jnp.float32(1e-12))   # guard degenerate inputs
    neg_inv_bw = ((-1.0 / bandwidth)
                  * kernel_mul ** (-jnp.arange(kernel_num, dtype=jnp.float32))
                  ).astype(jnp.float32)                      # (kernel_num,)

    # Row norms in both broadcast layouts (tiny O(n) arrays; relayout once in XLA).
    norms_col = norms                                        # (nb, tile, 1)
    norms_row = norms.reshape(nb, 1, tile)                   # (nb, 1, tile)

    # ---- Phase 2: triangular sweep over upper-triangle (tile x tile) blocks -----------
    ii, jj = np.triu_indices(nb)                             # row-major upper triangle
    bi_idx = jnp.asarray(ii, dtype=jnp.int32)
    bj_idx = jnp.asarray(jj, dtype=jnp.int32)
    ntiles = int(ii.shape[0])                                # nb * (nb + 1) / 2

    vmem_est = 2 * 2 * tile * d * itemsize + 8 * tile * tile * 4 + (4 << 20)
    vmem_limit = int(min(max(vmem_est, 32 << 20), 56 << 20))

    kern = functools.partial(_mmd_tile_kernel,
                             half_blocks=half_blocks, kernel_num=kernel_num)
    partials = pl.pallas_call(
        kern,
        out_shape=jax.ShapeDtypeStruct((ntiles, 1, tile), jnp.float32),
        grid_spec=pltpu.PrefetchScalarGridSpec(
            num_scalar_prefetch=2,                           # bi_idx, bj_idx -> SMEM
            grid=(ntiles,),
            in_specs=[
                pl.BlockSpec(memory_space=pltpu.MemorySpace.SMEM),            # -1/bw_i
                pl.BlockSpec((tile, d), lambda t, bi, bj: (bi[t], 0)),        # left rows
                pl.BlockSpec((tile, d), lambda t, bi, bj: (bj[t], 0)),        # right rows
                pl.BlockSpec((1, tile, 1), lambda t, bi, bj: (bi[t], 0, 0)),  # row norms
                pl.BlockSpec((1, 1, tile), lambda t, bi, bj: (bj[t], 0, 0)),  # col norms
            ],
            out_specs=pl.BlockSpec((1, 1, tile), lambda t, bi, bj: (t, 0, 0)),
        ),
        compiler_params=pltpu.CompilerParams(
            dimension_semantics=("parallel",),   # equal-work tiles -> balanced on v7x 2TC
            vmem_limit_bytes=vmem_limit),
    )(bi_idx, bj_idx, neg_inv_bw, total_c, total_c, norms_col, norms_row)

    # Single cross-lane reduction + normalization (each quadrant has b*b entries).
    return jnp.sum(partials) / float(b * b)


def transfer_loss(source, target, loss_type="mmd"):
    """JAX/Pallas equivalent of TransferLoss.forward(source, target)."""
    if loss_type == "mmd":
        return mmd_loss(source, target)
    # TODO(synk): 'adv' / 'advmmd' branches need a learned discriminator MLP + gradient
    # reversal; only the default 'mmd' path is implemented as a Pallas kernel.
    return jnp.float32(0.0)


def _mmd_reference(source, target, kernel_mul=2.0, kernel_num=5):
    """Pure-JAX reference (mirrors the PyTorch MMDLoss) for sanity checking."""
    b = source.shape[0]
    total = jnp.concatenate([source, target], axis=0).astype(jnp.float32)
    n = total.shape[0]
    diff = total[None, :, :] - total[:, None, :]
    l2 = jnp.sum(diff * diff, axis=2)
    bandwidth = jnp.sum(l2) / (n * n - n)
    bandwidth = bandwidth / (kernel_mul ** (kernel_num // 2))
    kernels = sum(jnp.exp(-l2 / (bandwidth * kernel_mul ** i)) for i in range(kernel_num))
    xx = jnp.mean(kernels[:b, :b])
    yy = jnp.mean(kernels[b:, b:])
    xy = jnp.mean(kernels[:b, b:])
    yx = jnp.mean(kernels[b:, :b])
    return xx + yy - xy - yx


if __name__ == "__main__":
    key = jax.random.PRNGKey(0)
    k_src, k_tgt = jax.random.split(key)
    B, D = 8, 32  # small feature batch: source/target are (B, D)
    source = jax.random.normal(k_src, (B, D), dtype=jnp.float32)
    target = jax.random.normal(k_tgt, (B, D), dtype=jnp.float32) + 0.5

    loss = transfer_loss(source, target, loss_type="mmd")
    loss = jax.block_until_ready(loss)

    ref = _mmd_reference(source, target)
    assert jnp.allclose(loss, ref, rtol=1e-3, atol=1e-4), (loss, ref)

    print("KERNEL_OK")
</pallas_src>

<mosaic_0001>
module attributes {stable_mosaic.version = 11 : i64} {
  func.func @_stats_kernel(%arg0: i32, %arg1: memref<8x32xf32, #tpu.memory_space<vmem>>, %arg2: memref<1x1xf32, #tpu.memory_space<vmem>>, %arg3: memref<1x1xf32, #tpu.memory_space<vmem>>, %arg4: memref<1x8x1xf32, #tpu.memory_space<vmem>>, %arg5: memref<1x1xf32, #tpu.memory_space<vmem>>, %arg6: memref<1x32xf32, #tpu.memory_space<vmem>>) attributes {dimension_semantics = [#tpu.dimension_semantics<arbitrary>], iteration_bounds = array<i64: 2>, scalar_prefetch = 0 : i64, scratch_operands = 2 : i64, tpu.core_type = #tpu.core_type<tc>, window_params = [{transform_indices = @transform_0, window_bounds = array<i64: 8, 32>}, {pipeline_mode = #tpu.pipeline_mode<synchronous>, transform_indices = @transform_1, window_bounds = array<i64: 1, 1>}, {pipeline_mode = #tpu.pipeline_mode<synchronous>, transform_indices = @transform_2, window_bounds = array<i64: 1, 1>}, {transform_indices = @transform_3, window_bounds = array<i64: 1, 8, 1>}]} {
    %c0_i32 = arith.constant 0 : i32
    %0 = arith.cmpi eq, %arg0, %c0_i32 : i32
    %1 = arith.extui %0 : i1 to i32
    %c0_i32_0 = arith.constant 0 : i32
    %2 = arith.cmpi ne, %1, %c0_i32_0 : i32
    scf.if %2 {
      %cst_16 = arith.constant 0.000000e+00 : f32
      %25 = vector.broadcast %cst_16 : f32 to vector<1x1xf32>
      %c0_17 = arith.constant 0 : index
      %c0_18 = arith.constant 0 : index
      %26 = vector.load %arg5[%c0_17, %c0_18] : memref<1x1xf32, #tpu.memory_space<vmem>>, vector<1x1xf32>
      tpu.vector_store %arg5[%c0_17, %c0_18], %25 {strides = array<i32>} : memref<1x1xf32, #tpu.memory_space<vmem>>, vector<1x1xf32>,
      %cst_19 = arith.constant 0.000000e+00 : f32
      %27 = vector.broadcast %cst_19 : f32 to vector<1x32xf32>
      %c0_20 = arith.constant 0 : index
      %c0_21 = arith.constant 0 : index
      %28 = vector.load %arg6[%c0_20, %c0_21] : memref<1x32xf32, #tpu.memory_space<vmem>>, vector<1x32xf32>
      tpu.vector_store %arg6[%c0_20, %c0_21], %27 {strides = array<i32>} : memref<1x32xf32, #tpu.memory_space<vmem>>, vector<1x32xf32>,
    } else {
    }
    %c0 = arith.constant 0 : index
    %c0_1 = arith.constant 0 : index
    %3 = vector.load %arg1[%c0, %c0_1] : memref<8x32xf32, #tpu.memory_space<vmem>>, vector<8x32xf32>
    %4 = arith.mulf %3, %3 : vector<8x32xf32>
    %cst = arith.constant dense<0.000000e+00> : vector<8xf32>
    %5 = vector.multi_reduction <add>, %4, %cst [1] : vector<8x32xf32> to vector<8xf32>
    %6 = vector.shape_cast %5 : vector<8xf32> to vector<8x1xf32>
    %7 = vector.shape_cast %6 : vector<8x1xf32> to vector<1x8x1xf32>
    %c0_2 = arith.constant 0 : index
    %c0_3 = arith.constant 0 : index
    %c0_4 = arith.constant 0 : index
    %8 = vector.load %arg4[%c0_2, %c0_3, %c0_4] : memref<1x8x1xf32, #tpu.memory_space<vmem>>, vector<1x8x1xf32>
    tpu.vector_store %arg4[%c0_2, %c0_3, %c0_4], %7 {strides = array<i32>} : memref<1x8x1xf32, #tpu.memory_space<vmem>>, vector<1x8x1xf32>,
    %c0_5 = arith.constant 0 : index
    %c0_6 = arith.constant 0 : index
    %9 = vector.load %arg5[%c0_5, %c0_6] : memref<1x1xf32, #tpu.memory_space<vmem>>, vector<1x1xf32>
    %10 = vector.shape_cast %6 : vector<8x1xf32> to vector<1x8x1xf32>
    %cst_7 = arith.constant dense<0.000000e+00> : vector<1xf32>
    %11 = vector.multi_reduction <add>, %10, %cst_7 [1, 2] : vector<1x8x1xf32> to vector<1xf32>
    %12 = vector.shape_cast %11 : vector<1xf32> to vector<1x1x1xf32>
    %13 = vector.extract %12[0, 0, 0] : f32 from vector<1x1x1xf32>
    %14 = vector.broadcast %13 : f32 to vector<1x1xf32>
    %15 = arith.addf %9, %14 : vector<1x1xf32>
    %c0_8 = arith.constant 0 : index
    %c0_9 = arith.constant 0 : index
    %16 = vector.load %arg5[%c0_8, %c0_9] : memref<1x1xf32, #tpu.memory_space<vmem>>, vector<1x1xf32>
    tpu.vector_store %arg5[%c0_8, %c0_9], %15 {strides = array<i32>} : memref<1x1xf32, #tpu.memory_space<vmem>>, vector<1x1xf32>,
    %c0_10 = arith.constant 0 : index
    %c0_11 = arith.constant 0 : index
    %17 = vector.load %arg6[%c0_10, %c0_11] : memref<1x32xf32, #tpu.memory_space<vmem>>, vector<1x32xf32>
    %cst_12 = arith.constant dense<0.000000e+00> : vector<32xf32>
    %18 = vector.multi_reduction <add>, %3, %cst_12 [0] : vector<8x32xf32> to vector<32xf32>
    %19 = vector.shape_cast %18 : vector<32xf32> to vector<1x32xf32>
    %20 = arith.addf %17, %19 : vector<1x32xf32>
    %c0_13 = arith.constant 0 : index
    %c0_14 = arith.constant 0 : index
    %21 = vector.load %arg6[%c0_13, %c0_14] : memref<1x32xf32, #tpu.memory_space<vmem>>, vector<1x32xf32>
    tpu.vector_store %arg6[%c0_13, %c0_14], %20 {strides = array<i32>} : memref<1x32xf32, #tpu.memory_space<vmem>>, vector<1x32xf32>,
    %c1_i32 = arith.constant 1 : i32
    %22 = arith.cmpi eq, %arg0, %c1_i32 : i32
    %23 = arith.extui %22 : i1 to i32
    %c0_i32_15 = arith.constant 0 : i32
    %24 = arith.cmpi ne, %23, %c0_i32_15 : i32
    scf.if %24 {
      %c0_16 = arith.constant 0 : index
      %c0_17 = arith.constant 0 : index
      %25 = vector.load %arg5[%c0_16, %c0_17] : memref<1x1xf32, #tpu.memory_space<vmem>>, vector<1x1xf32>
      %c0_18 = arith.constant 0 : index
      %c0_19 = arith.constant 0 : index
      %26 = vector.load %arg2[%c0_18, %c0_19] : memref<1x1xf32, #tpu.memory_space<vmem>>, vector<1x1xf32>
      tpu.vector_store %arg2[%c0_18, %c0_19], %25 {strides = array<i32>} : memref<1x1xf32, #tpu.memory_space<vmem>>, vector<1x1xf32>,
      %c0_20 = arith.constant 0 : index
      %c0_21 = arith.constant 0 : index
      %27 = vector.load %arg6[%c0_20, %c0_21] : memref<1x32xf32, #tpu.memory_space<vmem>>, vector<1x32xf32>
      %28 = arith.mulf %27, %27 : vector<1x32xf32>
      %29 = vector.shape_cast %28 : vector<1x32xf32> to vector<1x1x32xf32>
      %cst_22 = arith.constant dense<0.000000e+00> : vector<1xf32>
      %30 = vector.multi_reduction <add>, %29, %cst_22 [1, 2] : vector<1x1x32xf32> to vector<1xf32>
      %31 = vector.shape_cast %30 : vector<1xf32> to vector<1x1x1xf32>
      %32 = vector.extract %31[0, 0, 0] : f32 from vector<1x1x1xf32>
      %33 = vector.broadcast %32 : f32 to vector<1x1xf32>
      %c0_23 = arith.constant 0 : index
      %c0_24 = arith.constant 0 : index
      %34 = vector.load %arg3[%c0_23, %c0_24] : memref<1x1xf32, #tpu.memory_space<vmem>>, vector<1x1xf32>
      tpu.vector_store %arg3[%c0_23, %c0_24], %33 {strides = array<i32>} : memref<1x1xf32, #tpu.memory_space<vmem>>, vector<1x1xf32>,
    } else {
    }
    return
  }
  func.func @transform_0(%arg0: i32) -> (i32, i32) {
    %c0_i32 = arith.constant 0 : i32
    %c0_i32_0 = arith.constant 0 : i32
    return %arg0, %c0_i32 : i32, i32
  }
  func.func @transform_1(%arg0: i32) -> (i32, i32) {
    %c0_i32 = arith.constant 0 : i32
    %c0_i32_0 = arith.constant 0 : i32
    %c0_i32_1 = arith.constant 0 : i32
    return %c0_i32, %c0_i32_0 : i32, i32
  }
  func.func @transform_2(%arg0: i32) -> (i32, i32) {
    %c0_i32 = arith.constant 0 : i32
    %c0_i32_0 = arith.constant 0 : i32
    %c0_i32_1 = arith.constant 0 : i32
    return %c0_i32, %c0_i32_0 : i32, i32
  }
  func.func @transform_3(%arg0: i32) -> (i32, i32, i32) {
    %c0_i32 = arith.constant 0 : i32
    %c0_i32_0 = arith.constant 0 : i32
    %c0_i32_1 = arith.constant 0 : i32
    return %arg0, %c0_i32, %c0_i32_0 : i32, i32, i32
  }
}

</mosaic_0001>

<bundles_post_ra>
// kernel: tpu_custom_call.1
= control target key start
LH: loop header
LB: loop body
LE: loop exit
PB: predicated region body
PF: predicated region fallthrough
CT: control target
= control target key end

     0   :  { %9 = vsyncpa [#allocation5], 0  ;;  %s709_s0 = inlined_call_operand.hbm [shape: f32[16,32], index: 0, kind: input, shape index: {}]   ;;  %s710_s1 = inlined_call_operand.hbm [shape: f32[1,1], index: 1, kind: output, shape index: {0}]   ;;  %s711_s2 = inlined_call_operand.hbm [shape: f32[1,1], index: 2, kind: output, shape index: {1}]   ;;  %s712_s3 = inlined_call_operand.vmem [shape: f32[2,8,1], index: 3, kind: output, shape index: {2}]  }
   0x1   :  { %11 = vsyncpa [#allocation5 + $0x1], 0 }
   0x2   :  { %12 = vsyncpa [#allocation6], 0 }
   0x3   :  { %13 = vsyncpa [#allocation9], 0  ;;  %s589_s12 = smov 0   ;;  %s591_s13 = smov 0  }
   0x4   :  { %s593_s14 = smov 0   ;;  %s595_s15 = smov 0  }
   0x5 LB: > { %s608_s16 = sadd.s32 4294967295, %s564_s15   ;;  %s611_s17 = sadd.s32 1, %s564_s15   ;;  %s564_s15 = sphi %s595_s15, %s719_s15   ;;  %s560_s14 = sphi %s593_s14, %s718_s14   ;;  %s556_s13 = sphi %s591_s13, %s717_s13   ;;  %s552_s12 = sphi %s589_s12, %s716_s12  }
   0x6   : > { %s23_s18 = ssub.s32 %s564_s15, %s611_s17  ;;  %s26_s19 = sadd.s32 1, %s560_s14 }
   0x7   : > { %p24_p0 = scmp.eq.s32.totalorder %s23_s18, 0  ;;  %p33_p1 = scmp.ne.s32.totalorder %s560_s14, %s556_s13 }
   0x8   : > { %p34_p2 = scmp.eq.s32.totalorder %s564_s15, 0  ;;  %p39_p3 = scmp.ne.s32.totalorder %s556_s13, %s552_s12 }
   0x9   : > { %s621_s20 = scalar_select %p24_p0, %s560_s14, %s26_s19  }
   0xa   : > { %p623_p4 = por %p34_p2, %p33_p1  ;;  %p40_p5 = scmp.eq.s32.totalorder %s608_s16, 0 }
   0xb   : > { %p396_p6 = scmp.lt.s32.totalorder %s564_s15, 2  ;;  %s131_s23 = sand.u32 1, %s560_s14  }
   0xc   : > { %p629_p7 = por %p40_p5, %p39_p3  ;;  %s365_s24 = sshll.u32 %s131_s23, 3 }
   0xd   : > { %s366_s25 = sshll.u32 %s564_s15, 3  ;;  %s135_s29 = scalar_lea.vmem [#allocation4], %s365_s24 }
   0xe   : > { %s139_s28 = scalar_lea.hbm %s709_s0, %s366_s25  ;;  %s143_s30 = sshll.u32 %s135_s29, 4  ;;  %s144_s30 = int_to_ptr.vmem [resolvable:$true] %s143_s30 }
   0xf   : > { %s141_s4 = sshll.u32 %s139_s28, 4  ;;  %p640_p8 = pnand %p396_p6, %p623_p4  ;;  %s142_s4 = int_to_ptr.hbm [resolvable:$true] %s141_s4 }
  0x10   : > { %p367_p9 = scmp.ge.s32.totalorder %s564_s15, 1  ;;  %p148_p10 = scmp.lt.s32.totalorder %s564_s15, 3 }
  0x11   : > { %s132_s6 = scalar_lea.sflag [#allocation5], %s131_s23  ;;  %s436_s7 = sshra.s32 %s142_s4, 4  ;;  %s437_s7 = int_to_ptr.hbm [resolvable:$true] %s436_s7 }
  0x12   : > { %s438_s8 = scalar_lea.hbm %s437_s7, 8  ;;  %p440_p12 = pneg %p640_p8 }
  0x13   : > { %p439_p11 = scmp.ne.s32.totalorder %s437_s7, %s438_s8  ;;  %s443_s11 = scalar_lea.hbm %s709_s0, 16 }
  0x14   : > { %p444_p1 = scmp.lt.s32.totalorder %s437_s7, %s709_s0  ;;  %p445_p2 = scmp.lt.s32.totalorder %s443_s11, %s438_s8 }
  0x15   : > { %p441_p13 = pnand %p440_p12, %p439_p11 }
  0x16   : > { %p446_p3 = por %p445_p2, %p444_p1 }
  0x17   : > { %p442_p0 = pneg %p441_p13 }
  0x19   : > { %p447_p4 = pnand %p446_p3, %p442_p0 }
  0x1b   : > { %450 = shalt.err (!%p447_p4)
}
  0x1c   : > { %395 = dma.hbm_to_vmem [thread:$0]  (!%p640_p8), %s142_s4, 128, %s144_s30, %s132_s6  }
  0x1d   : > { %p149_p5 = pnand %p367_p9, %p148_p10 }
  0x1e   : > { %s154_s19 = sand.u32 (!%p149_p5), 1, %s556_s13  }
  0x1f   : > { %152 = sbr.rel (%p149_p5) target bundleno = 545 (0x221), region = 24  ;;  %s368_s21 = sshll.u32 (!%p149_p5), %s154_s19, 3 }
  0x20   : > { %s155_s23 = scalar_lea.sflag (!%p149_p5), [#allocation5], %s154_s19  ;;  %s158_s24 = scalar_lea.vmem (!%p149_p5), [#allocation4], %s368_s21 }
  0x24   : > { %539 = dma.done.wait (%p629_p7), %s155_s23, 128  }
  0x25   : > { %541 = vsyncadd (%p629_p7), %s155_s23, 4294967168  ;;  %p181_p6 = scmp.lt.s32.totalorder %s608_s16, 1  ;;  %p370_p8 = scmp.ne.s32.totalorder %s608_s16, 0 }
  0x27   : > { %s182_s25 = scalar_select %p181_p6, %s608_s16, 1 }
  0x28   : > { %188 = sbr.rel (%p370_p8) target bundleno = 48 (0x30), region = 32 }
  0x29   : > { %s369_s26 = sshll.u32 %s182_s25, 3 }
  0x2a   : > { %s184_s28 = scalar_lea.vmem %s712_s3, %s369_s26 }
  0x2d   : > { %vm189_vm0 = vcmask 0   ;;  %vm191_vm1 = vcmask 253952   ;;  %v566_v0 = vmov 0.0  }
  0x2e   : > { %190 = vst.msk [vmem:[#allocation2] sm:$0x1] %vm189_vm0, %v566_v0 }
  0x2f   : > { %192 = vst.msk [vmem:[#allocation3] sm:$0x1] %vm191_vm1, %v566_v0 }
  0x30 PF: > { %v193_v1 = vld [vmem:[%s158_s24] sm:$0xff]  ;;  %vm195_vm2 = vcmask 261120   ;;  %vm225_vm3 = vcmask 253952   ;;  %vm199_vm4 = vcmask 7168   ;;  %vm214_vm5 = vcmask 0   ;;  %p371_p7 = scmp.ne.s32.totalorder %s608_s16, 1 }
  0x31   : > { %v194_v2 = vmul.f32 %v193_v1, %v193_v1  ;;  %v217_v3 = vsel %vm195_vm2, %v193_v1, 0.0 }
  0x32   : > { %v218_v4 = vrot.slane %v217_v3, 4 }
  0x33   : > { %v196_v5 = vsel %vm195_vm2, %v194_v2, 0.0 }
  0x34   : > { %v219_v6 = vadd.f32 %v218_v4, %v217_v3  ;;  %197 = vadd.xlane.f32.xlu0 %v196_v5 }
  0x35   : > { %v201_v22 = vld [vmem:[#allocation2] sm:$0x1] }
  0x36   : > { %v220_v7 = vrot.slane %v219_v6, 2  ;;  %v216_v10 = vld [vmem:[#allocation3] sm:$0x1] }
  0x38   : > { %v221_v8 = vadd.f32 %v220_v7, %v219_v6 }
  0x3a   : > { %v222_v9 = vrot.slane %v221_v8, 1 }
  0x3c   : > { %v223_v11 = vadd.f32 %v222_v9, %v221_v8 }
  0x3e   : > { %v224_v12 = vadd.f32 %v223_v11, %v216_v10 }
  0x40   : > { %226 = vst.msk [vmem:[#allocation3] sm:$0x1] %vm225_vm3, %v224_v12 }
  0xa7   : > { %v198_v13 = vpop.xlane.xlu0 %197 }
  0xa8   : > { %v202_v14 = vsel %vm199_vm4, %v198_v13, 0.0  ;;  %200 = vst.msk [vmem:[%s184_s28] sm:$0xff] %vm199_vm4, %v198_v13 }
  0xa9   : > { %203 = vadd.xlane.f32.xlu0 %v202_v14 }
 0x11c   : > { %v204_v15 = vpop.xlane.xlu0 %203 }
 0x11d   : > { %v205_v16 = vrot.slane %v204_v15, 4 }
 0x11f   : > { %v206_v17 = vadd.f32 %v205_v16, %v204_v15 }
 0x121   : > { %v207_v18 = vrot.slane %v206_v17, 2 }
 0x123   : > { %v208_v19 = vadd.f32 %v207_v18, %v206_v17 }
 0x125   : > { %v209_v20 = vrot.slane %v208_v19, 1 }
 0x127   : > { %v210_v21 = vadd.f32 %v209_v20, %v208_v19 }
 0x129   : > { %378 = vpush %v210_v21 }
 0x15a   : > { %s379_s22 = spop %378  ;;  %230 = sbr.rel (%p371_p7) target bundleno = 535 (0x217), region = 36 }
 0x15b   : > { %v212_v23 = vstv %s379_s22 }
 0x15c   : > { %v213_v24 = vadd.f32 %v212_v23, %v201_v22 }
 0x15e   : > { %215 = vst.msk [vmem:[#allocation2] sm:$0x1] %vm214_vm5, %v213_v24 }
 0x15f   : > { %v233_v26 = vld [vmem:[#allocation3] sm:$0x1] }
 0x160   : > { %v234_v27 = vmul.f32 %v233_v26, %v233_v26 }
 0x162   : > { %v235_v28 = vsel %vm225_vm3, %v234_v27, 0.0 }
 0x163   : > { %236 = vadd.xlane.f32.xlu0 %v235_v28 }
 0x165   : > { %v231_v25 = vld [vmem:[#allocation2] sm:$0x1] }
 0x166   : > { %232 = vst.msk [vmem:[#allocation7] sm:$0x1] %vm214_vm5, %v231_v25 }
 0x1d6   : > { %v237_v29 = vpop.xlane.xlu0 %236 }
 0x1d7   : > { %v238_v30 = vrot.slane %v237_v29, 4 }
 0x1d9   : > { %v239_v31 = vadd.f32 %v238_v30, %v237_v29 }
 0x1db   : > { %v240_v32 = vrot.slane %v239_v31, 2 }
 0x1dd   : > { %v241_v33 = vadd.f32 %v240_v32, %v239_v31 }
 0x1df   : > { %v242_v34 = vrot.slane %v241_v33, 1 }
 0x1e1   : > { %v243_v35 = vadd.f32 %v242_v34, %v241_v33 }
 0x1e3   : > { %380 = vpush %v243_v35 }
 0x214   : > { %s381_s29 = spop %380 }
 0x215   : > { %v245_v36 = vstv %s381_s29 }
 0x216   : > { %246 = vst.msk [vmem:[#allocation8] sm:$0x1] %vm214_vm5, %v245_v36 }
 0x217 PF: > { %p397_p9 = scmp.eq.s32.totalorder %s608_s16, 1  ;;  %s567_s30 = smov [#allocation7]  }
 0x218   : > { %s257_s4 = sshll.u32 %s567_s30, 4  ;;  %s259_s7 = sshll.u32 %s710_s1, 4  ;;  %s258_s4 = int_to_ptr.vmem [resolvable:$true] %s257_s4  ;;  %s260_s7 = int_to_ptr.hbm [resolvable:$true] %s259_s7 }
 0x219   : > { %385 = dma.vmem_to_hbm [thread:$0]  (%p397_p9), %s258_s4, 16, %s260_s7, [#allocation6]  }
 0x21a   : > { %s271_s10 = sshll.u32 %s711_s2, 4  ;;  %s568_s11 = smov [#allocation8]   ;;  %s272_s10 = int_to_ptr.hbm [resolvable:$true] %s271_s10 }
 0x21b   : > { %s269_s12 = sshll.u32 %s568_s11, 4  ;;  %s270_s12 = int_to_ptr.vmem [resolvable:$true] %s269_s12 }
 0x21c   : > { %387 = dma.vmem_to_hbm [thread:$0]  (%p397_p9), %s270_s12, 16, %s272_s10, [#allocation9]  }
 0x21d   : > { %543 = dma.done.wait (%p397_p9), [#allocation6], 16  }
 0x21e   : > { %545 = vsyncadd (%p397_p9), [#allocation6], 4294967280 }
 0x21f   : > { %547 = dma.done.wait (%p397_p9), [#allocation9], 16  }
 0x220   : > { %549 = vsyncadd (%p397_p9), [#allocation9], 4294967280 }
 0x221 PF: > { %p16_p10 = scmp.ge.s32.totalorder %s611_s17, 4   ;;  %s716_s12 = smov %s556_s13 }
 0x222   : > { %s717_s13 = smov %s560_s14  ;;  %s718_s14 = smov %s621_s20 }
 0x223   : > { %s719_s15 = smov %s611_s17  ;;  %18 = sbr.rel (!%p16_p10) target bundleno = 5 (0x5), region = 89 }
 0x228   :  { %300 = vsyncpa [#allocation5], 1 }
 0x229   :  { %302 = vsyncpa [#allocation5 + $0x1], 1 }
 0x22a   :  { %303 = vsyncpa [#allocation6], 1 }
 0x22b   :  { %305 = vsyncpa [#allocation6 + $0x1], 1 }
 0x22c   :  { %306 = vsyncpa [#allocation9], 1 }

</bundles_post_ra>
